<compile_context>
chip_gen: v6e
topology: v6e:2x2x1
jax: 0.10.0
libtpu: 0.0.40
codegen_flags: <defaults>
</compile_context>

<pallas_src>
import numpy as np
import jax
import jax.numpy as jnp
from jax.experimental import pallas as pl
from jax.experimental.pallas import tpu as pltpu


def _rup(x, m):
    return ((x + m - 1) // m) * m


# ---------------------------------------------------------------------------
# bilinear (align_corners=True) interpolation matrices  [XLA glue, tiny]
# ---------------------------------------------------------------------------
def _interp_matrix(out_size, in_size):
    """1-D bilinear, align_corners=True interpolation matrix (out, in), f32."""
    R = np.zeros((out_size, in_size), np.float32)
    if in_size == 1 or out_size == 1:
        R[:, 0] = 1.0
        return R
    src = np.arange(out_size, dtype=np.float64) * (in_size - 1) / (out_size - 1)
    i0 = np.clip(np.floor(src).astype(np.int64), 0, in_size - 1)
    i1 = np.minimum(i0 + 1, in_size - 1)
    w = (src - i0).astype(np.float32)
    rows = np.arange(out_size)
    R[rows, i0] += 1.0 - w
    R[rows, i1] += w
    return R


def bilinear_resize_align_corners(x, out_h, out_w):
    """x: (..., h, w) f32 -> (..., out_h, out_w), PyTorch bilinear align_corners=True."""
    h, w = x.shape[-2], x.shape[-1]
    Rh = jnp.asarray(_interp_matrix(out_h, h))
    Rw = jnp.asarray(_interp_matrix(out_w, w))
    return jnp.einsum('...hw,Hh,Ww->...HW', x, Rh, Rw)


# ---------------------------------------------------------------------------
# Pallas kernel: fused weighted-GAP prototype GEMM
# ---------------------------------------------------------------------------
def _proto_kernel(mask_ref, x_ref, inv_ref, o_ref):
    """One (batch, k-chunk) grid step of  proto = (mask @ x) * inv_area.

    mask_ref: (COMp, tk) bf16  -- superpixel masks, spatial chunk k
    x_ref:    (tk, Cp)   bf16  -- features in NHWC-flat layout, spatial chunk k
    inv_ref:  (COMp, 1)  f32   -- precomputed 1 / (mask area + 5e-4)
    o_ref:    (COMp, Cp) f32   -- output block, resident across k (accumulator)
    """
    k = pl.program_id(1)

    @pl.when(k == 0)
    def _():
        o_ref[...] = jnp.zeros_like(o_ref)

    # bf16 x bf16 -> f32 accumulation on the MXU.
    o_ref[...] += jnp.dot(mask_ref[...], x_ref[...],
                          preferred_element_type=jnp.float32)

    @pl.when(k == pl.num_programs(1) - 1)
    def _():
        o_ref[...] = o_ref[...] * inv_ref[...]


def get_prototype(x, ss_map, *, tk=1024):
    """GET_Prototype forward.

    x: (B, C, H, W) f32, ss_map: (B, COM, h, w) -> (B, COM, C) f32.
    """
    B, C, H, W = x.shape
    COM, sh, sw = ss_map.shape[1], ss_map.shape[2], ss_map.shape[3]
    HW = H * W

    ss = ss_map.astype(jnp.float32)
    Rh = jnp.asarray(_interp_matrix(H, sh))
    Rw = jnp.asarray(_interp_matrix(W, sw))

    # 1) bilinear (align_corners=True) upsample of the superpixel maps (tiny op),
    #    produced directly in bf16 for the kernel.
    mask = jnp.einsum('bihw,Hh,Ww->biHW', ss, Rh, Rw).astype(jnp.bfloat16)

    # 2) exact f32 mask area from the tiny ss_map (the upsample is linear):
    #    sum_{H,W} mask[b,i] = sum_{h,w} ss[b,i,h,w] * colsum(Rh)[h] * colsum(Rw)[w]
    area = jnp.einsum('bihw,h,w->bi', ss, Rh.sum(0), Rw.sum(0))
    inv_area = (1.0 / (area + 0.0005)).reshape(B, COM, 1)

    # 3) flatten & lay out for the MXU: A = mask (B, COM, HW), Bm = x (B, HW, C).
    a = mask.reshape(B, COM, HW)
    bm = jnp.transpose(x, (0, 2, 3, 1)).reshape(B, HW, C).astype(jnp.bfloat16)

    # 4) tile sizes: COM -> sublane multiple of 8, C -> lane multiple of 128,
    #    tk -> spatial-reduction chunk (multiple of 128, VMEM-friendly).
    COMp = _rup(COM, 8)
    Cp = _rup(C, 128)
    tk = min(tk, _rup(HW, 128))
    max_tk = max(128, ((6 << 20) // (4 * (Cp + COMp))) // 128 * 128)  # ~6 MiB of
    tk = min(tk, max_tk)                                              # 2x-buffered inputs
    HWp = _rup(HW, tk)

    # 5) pad ragged edges only (no-op when already aligned).
    if (COMp, HWp) != (COM, HW):
        a = jnp.pad(a, ((0, 0), (0, COMp - COM), (0, HWp - HW)))
    if (HWp, Cp) != (HW, C):
        bm = jnp.pad(bm, ((0, 0), (0, HWp - HW), (0, Cp - C)))
    if COMp != COM:
        inv_area = jnp.pad(inv_area, ((0, 0), (0, COMp - COM), (0, 0)))

    grid = (B, HWp // tk)
    out = pl.pallas_call(
        _proto_kernel,
        out_shape=jax.ShapeDtypeStruct((B, COMp, Cp), jnp.float32),
        grid_spec=pltpu.PrefetchScalarGridSpec(
            num_scalar_prefetch=0,
            grid=grid,
            in_specs=[
                pl.BlockSpec((None, COMp, tk), lambda b, k: (b, 0, k)),
                pl.BlockSpec((None, tk, Cp), lambda b, k: (b, k, 0)),
                pl.BlockSpec((None, COMp, 1), lambda b, k: (b, 0, 0)),
            ],
            out_specs=pl.BlockSpec((None, COMp, Cp), lambda b, k: (b, 0, 0)),
        ),
        compiler_params=pltpu.CompilerParams(
            dimension_semantics=("parallel", "arbitrary")),
        cost_estimate=pl.CostEstimate(
            flops=2 * B * COMp * Cp * HWp,
            transcendentals=0,
            bytes_accessed=a.size * 2 + bm.size * 2
            + inv_area.size * 4 + B * COMp * Cp * 4),
    )(a, bm, inv_area)
    return out[:, :COM, :C]


# ---------------------------------------------------------------------------
# pure-JAX reference (f32) for correctness checking
# ---------------------------------------------------------------------------
def get_prototype_ref(x, ss_map):
    B, C, H, W = x.shape
    COM = ss_map.shape[1]
    mask = bilinear_resize_align_corners(ss_map.astype(jnp.float32), H, W)
    mf = mask.reshape(B, COM, H * W)
    xf = x.reshape(B, C, H * W)
    num = jnp.einsum('bik,bck->bic', mf, xf)
    area = jnp.sum(mf, axis=-1)[..., None] + 0.0005
    return num / area


# ---------------------------------------------------------------------------
if __name__ == "__main__":
    key = jax.random.PRNGKey(0)
    k1, k2, k3, k4 = jax.random.split(key, 4)

    proto_fn = jax.jit(get_prototype)

    # Case 1: model-like small shapes (128 feature channels, 16 superpixels).
    B, C, H, W, COM = 2, 128, 32, 32, 16
    x = jax.random.normal(k1, (B, C, H, W), jnp.float32)
    ss_map = jax.random.uniform(k2, (B, COM, 8, 8), jnp.float32)
    out = proto_fn(x, ss_map)
    jax.block_until_ready(out)
    assert out.shape == (B, COM, C)
    ref = get_prototype_ref(x, ss_map)
    np.testing.assert_allclose(np.asarray(out), np.asarray(ref), rtol=2e-2, atol=1e-2)

    # Case 2: ragged shapes exercising the edge-padding path.
    B2, C2, H2, W2, COM2 = 1, 72, 18, 18, 11
    x2 = jax.random.normal(k3, (B2, C2, H2, W2), jnp.float32)
    ss2 = jax.random.uniform(k4, (B2, COM2, 6, 6), jnp.float32)
    out2 = proto_fn(x2, ss2)
    jax.block_until_ready(out2)
    assert out2.shape == (B2, COM2, C2)
    ref2 = get_prototype_ref(x2, ss2)
    np.testing.assert_allclose(np.asarray(out2), np.asarray(ref2), rtol=2e-2, atol=1e-2)

    print("KERNEL_OK")
</pallas_src>

<mosaic_0001>
module attributes {stable_mosaic.version = 11 : i64} {
  func.func @_proto_kernel(%arg0: i32, %arg1: i32, %arg2: memref<1x16x1024xbf16, #tpu.memory_space<vmem>>, %arg3: memref<1x1024x128xbf16, #tpu.memory_space<vmem>>, %arg4: memref<1x16x1xf32, #tpu.memory_space<vmem>>, %arg5: memref<1x16x128xf32, #tpu.memory_space<vmem>>) attributes {dimension_semantics = [#tpu.dimension_semantics<parallel>, #tpu.dimension_semantics<arbitrary>], iteration_bounds = array<i64: 2, 1>, scalar_prefetch = 0 : i64, scratch_operands = 0 : i64, tpu.core_type = #tpu.core_type<tc>, window_params = [{transform_indices = @transform_0, window_bounds = array<i64: 1, 16, 1024>}, {transform_indices = @transform_1, window_bounds = array<i64: 1, 1024, 128>}, {transform_indices = @transform_2, window_bounds = array<i64: 1, 16, 1>}, {transform_indices = @transform_3, window_bounds = array<i64: 1, 16, 128>}]} {
    %c0_i32 = arith.constant 0 : i32
    %0 = arith.cmpi eq, %arg1, %c0_i32 : i32
    %1 = arith.extui %0 : i1 to i32
    %c0_i32_0 = arith.constant 0 : i32
    %2 = arith.cmpi ne, %1, %c0_i32_0 : i32
    scf.if %2 {
      %cst_14 = arith.constant 0.000000e+00 : f32
      %17 = vector.broadcast %cst_14 : f32 to vector<16x128xf32>
      %c0_15 = arith.constant 0 : index
      %c0_16 = arith.constant 0 : index
      %c0_17 = arith.constant 0 : index
      %18 = vector.load %arg5[%c0_15, %c0_16, %c0_17] : memref<1x16x128xf32, #tpu.memory_space<vmem>>, vector<1x16x128xf32>
      %19 = vector.shape_cast %18 : vector<1x16x128xf32> to vector<16x128xf32>
      %20 = vector.shape_cast %17 : vector<16x128xf32> to vector<1x16x128xf32>
      tpu.vector_store %arg5[%c0_15, %c0_16, %c0_17], %20 {strides = array<i32>} : memref<1x16x128xf32, #tpu.memory_space<vmem>>, vector<1x16x128xf32>,
    } else {
    }
    %c0 = arith.constant 0 : index
    %c0_1 = arith.constant 0 : index
    %c0_2 = arith.constant 0 : index
    %3 = vector.load %arg5[%c0, %c0_1, %c0_2] : memref<1x16x128xf32, #tpu.memory_space<vmem>>, vector<1x16x128xf32>
    %4 = vector.shape_cast %3 : vector<1x16x128xf32> to vector<16x128xf32>
    %c0_3 = arith.constant 0 : index
    %c0_4 = arith.constant 0 : index
    %c0_5 = arith.constant 0 : index
    %5 = vector.load %arg2[%c0_3, %c0_4, %c0_5] : memref<1x16x1024xbf16, #tpu.memory_space<vmem>>, vector<1x16x1024xbf16>
    %6 = vector.shape_cast %5 : vector<1x16x1024xbf16> to vector<16x1024xbf16>
    %c0_6 = arith.constant 0 : index
    %c0_7 = arith.constant 0 : index
    %c0_8 = arith.constant 0 : index
    %7 = vector.load %arg3[%c0_6, %c0_7, %c0_8] : memref<1x1024x128xbf16, #tpu.memory_space<vmem>>, vector<1x1024x128xbf16>
    %8 = vector.shape_cast %7 : vector<1x1024x128xbf16> to vector<1024x128xbf16>
    %cst = arith.constant dense<0.000000e+00> : vector<16x128xf32>
    %9 = tpu.matmul %6, %8, %cst {dimension_numbers = #tpu.dot_dimension_numbers<[1], [0], [0], [1], [0, 0, 1, 1], [], []>} : vector<16x1024xbf16>, vector<1024x128xbf16>, vector<16x128xf32> -> vector<16x128xf32>
    %10 = arith.addf %4, %9 : vector<16x128xf32>
    %c0_9 = arith.constant 0 : index
    %c0_10 = arith.constant 0 : index
    %c0_11 = arith.constant 0 : index
    %11 = vector.load %arg5[%c0_9, %c0_10, %c0_11] : memref<1x16x128xf32, #tpu.memory_space<vmem>>, vector<1x16x128xf32>
    %12 = vector.shape_cast %11 : vector<1x16x128xf32> to vector<16x128xf32>
    %13 = vector.shape_cast %10 : vector<16x128xf32> to vector<1x16x128xf32>
    tpu.vector_store %arg5[%c0_9, %c0_10, %c0_11], %13 {strides = array<i32>} : memref<1x16x128xf32, #tpu.memory_space<vmem>>, vector<1x16x128xf32>,
    %c0_i32_12 = arith.constant 0 : i32
    %14 = arith.cmpi eq, %arg1, %c0_i32_12 : i32
    %15 = arith.extui %14 : i1 to i32
    %c0_i32_13 = arith.constant 0 : i32
    %16 = arith.cmpi ne, %15, %c0_i32_13 : i32
    scf.if %16 {
      %c0_14 = arith.constant 0 : index
      %c0_15 = arith.constant 0 : index
      %c0_16 = arith.constant 0 : index
      %17 = vector.load %arg5[%c0_14, %c0_15, %c0_16] : memref<1x16x128xf32, #tpu.memory_space<vmem>>, vector<1x16x128xf32>
      %18 = vector.shape_cast %17 : vector<1x16x128xf32> to vector<16x128xf32>
      %c0_17 = arith.constant 0 : index
      %c0_18 = arith.constant 0 : index
      %c0_19 = arith.constant 0 : index
      %19 = vector.load %arg4[%c0_17, %c0_18, %c0_19] : memref<1x16x1xf32, #tpu.memory_space<vmem>>, vector<1x16x1xf32>
      %20 = vector.shape_cast %19 : vector<1x16x1xf32> to vector<16x1xf32>
      %21 = vector.broadcast %20 : vector<16x1xf32> to vector<16x128xf32>
      %22 = arith.mulf %18, %21 : vector<16x128xf32>
      %c0_20 = arith.constant 0 : index
      %c0_21 = arith.constant 0 : index
      %c0_22 = arith.constant 0 : index
      %23 = vector.load %arg5[%c0_20, %c0_21, %c0_22] : memref<1x16x128xf32, #tpu.memory_space<vmem>>, vector<1x16x128xf32>
      %24 = vector.shape_cast %23 : vector<1x16x128xf32> to vector<16x128xf32>
      %25 = vector.shape_cast %22 : vector<16x128xf32> to vector<1x16x128xf32>
      tpu.vector_store %arg5[%c0_20, %c0_21, %c0_22], %25 {strides = array<i32>} : memref<1x16x128xf32, #tpu.memory_space<vmem>>, vector<1x16x128xf32>,
    } else {
    }
    return
  }
  func.func @transform_0(%arg0: i32, %arg1: i32) -> (i32, i32, i32) {
    %c0_i32 = arith.constant 0 : i32
    %c0_i32_0 = arith.constant 0 : i32
    return %arg0, %c0_i32, %arg1 : i32, i32, i32
  }
  func.func @transform_1(%arg0: i32, %arg1: i32) -> (i32, i32, i32) {
    %c0_i32 = arith.constant 0 : i32
    %c0_i32_0 = arith.constant 0 : i32
    return %arg0, %arg1, %c0_i32 : i32, i32, i32
  }
  func.func @transform_2(%arg0: i32, %arg1: i32) -> (i32, i32, i32) {
    %c0_i32 = arith.constant 0 : i32
    %c0_i32_0 = arith.constant 0 : i32
    %c0_i32_1 = arith.constant 0 : i32
    return %arg0, %c0_i32, %c0_i32_0 : i32, i32, i32
  }
  func.func @transform_3(%arg0: i32, %arg1: i32) -> (i32, i32, i32) {
    %c0_i32 = arith.constant 0 : i32
    %c0_i32_0 = arith.constant 0 : i32
    %c0_i32_1 = arith.constant 0 : i32
    return %arg0, %c0_i32, %c0_i32_0 : i32, i32, i32
  }
}

</mosaic_0001>

<bundles_post_ra>
// kernel: get_prototype.1
= control target key start
LH: loop header
LB: loop body
LE: loop exit
PB: predicated region body
PF: predicated region fallthrough
CT: control target
= control target key end

     0   :  { %8 = vsyncpa [#allocation3], 0  ;;  %s1739_s0 = inlined_call_operand.vmem [shape: bf16[2,16,1024], index: 0, kind: input, shape index: {}]   ;;  %s1740_s1 = inlined_call_operand.vmem [shape: bf16[2,1024,128], index: 1, kind: input, shape index: {}]   ;;  %s1741_s2 = inlined_call_operand.vmem [shape: f32[2,16,1], index: 2, kind: input, shape index: {}]   ;;  %s1742_s3 = inlined_call_operand.hbm [shape: f32[2,16,128], index: 3, kind: output, shape index: {}]  }
   0x1   :  { %10 = vsyncpa [#allocation3 + $0x1], 0  ;;  %s1538_s12 = smov 0   ;;  %s1540_s13 = smov 0  }
   0x2   :  { %s1542_s14 = smov 0   ;;  %s1544_s15 = smov 0  }
   0x3   :  { %s1546_s16 = smov 0   ;;  %s1548_s17 = smov 0  }
   0x4 LB: > { %s1131_s18 = sadd.s32 4294967295, %s1512_s17   ;;  %s1132_s19 = sadd.s32 4294967294, %s1512_s17   ;;  %s1512_s17 = sphi %s1548_s17, %s16_s17   ;;  %s1508_s16 = sphi %s1546_s16, %s1749_s16   ;;  %s1504_s15 = sphi %s1544_s15, %s1748_s15   ;;  %s1500_s14 = sphi %s1542_s14, %s1747_s14   ;;  %s1496_s13 = sphi %s1540_s13, %s1746_s13   ;;  %s1492_s12 = sphi %s1538_s12, %s1745_s12  }
   0x5   : > { %s28_s20 = sadd.s32 1, %s1508_s16  ;;  %s117_s21 = sadd.s32 1, %s1500_s14 }
   0x6   : > { %p30_p0 = scmp.ge.s32.totalorder %s28_s20, 2  ;;  %p127_p1 = scmp.ne.s32.totalorder %s1500_s14, %s1496_s13 }
   0x7   : > { %p128_p2 = scmp.eq.s32.totalorder %s1131_s18, 1  ;;  %p133_p3 = scmp.ne.s32.totalorder %s1496_s13, %s1492_s12 }
   0x8   : > { %s1751_s20 = smov (%p30_p0, %s28_s20), 0  ;;  %p134_p5 = scmp.eq.s32.totalorder %s1132_s19, 1 }
   0x9   : > { %p1578_p4 = por %p128_p2, %p127_p1  ;;  %s114_s23 = ssub.s32 %s1508_s16, %s1751_s20 }
   0xa   : > { %p1135_p6 = scmp.ge.s32.totalorder %s1512_s17, 1  ;;  %p115_p7 = scmp.eq.s32.totalorder %s114_s23, 0 }
   0xb   : > { %p1585_p8 = por %p134_p5, %p133_p3  ;;  %p186_p9 = scmp.lt.s32.totalorder %s1512_s17, 3 }
   0xc   : > { %s1591_s25 = scalar_select %p115_p7, %s1500_s14, %s117_s21  }
   0xd   : > { %p187_p10 = pnand %p1135_p6, %p186_p9 }
   0xe   : > { %p229_p11 = scmp.lt.s32.totalorder (!%p187_p10), %s1504_s15, 1  ;;  %s225_s18 = sand.u32 (!%p187_p10), 1, %s1496_s13  }
   0xf   : > { %190 = sbr.rel (%p187_p10) target bundleno = 311 (0x137), region = 32  ;;  %s1136_s19 = sshll.u32 (!%p187_p10), %s225_s18, 4 }
  0x10   : > { %s1223_s21 = sshll.u32 (!%p187_p10), %s1504_s15, 8  ;;  %s227_s23 = scalar_lea.vmem (!%p187_p10), [#allocation2], %s1136_s19 }
  0x11   : > { %s1690_s29 = scalar_lea.hbm (!%p187_p10), %s1742_s3, %s1223_s21 }
  0x14   : > { %v1514_v0 = vmov 0   ;;  %s1595_s26 = scalar_select %p229_p11, %s1504_s15, 1 }
  0x15   : > { %1371 = vset.pattern.permute.xlu0 %v1514_v0  ;;  %s1515_s15 = smov [#allocation2]  }
  0x16   : > { %s1221_s27 = sshll.u32 %s1595_s26, 9  ;;  %s1220_s4 = sshll.u32 %s1595_s26, 6 }
  0x17   : > { %s1601_s30 = scalar_lea.vmem %s1740_s1, %s1221_s27  ;;  %s1637_s7 = scalar_lea.vmem %s1739_s0, %s1220_s4 }
  0x18   : > { %v1372_v1 = vld [vmem:[%s1601_s30 + $0x78] sm:$0xff]   ;;  %v1376_v5 = vld [vmem:[%s1601_s30 + $0x70] sm:$0xff]   ;;  %v1380_v9 = vld [vmem:[%s1601_s30 + $0x68] sm:$0xff]   ;;  %s1222_s8 = sshll.u32 %s1595_s26, 4  ;;  %s1025_s26 = sshll.u32 %s227_s23, 4  ;;  %s1692_s26 = int_to_ptr.vmem [resolvable:$true] %s1025_s26 }
  0x19   : > { %v1373_v2 = vld [vmem:[%s1601_s30 + $0xf8] sm:$0xff]   ;;  %1224 = vmatprep.subr.bf16.mxu0 %v1372_v1  ;;  %v1377_v6 = vld [vmem:[%s1601_s30 + $0xf0] sm:$0xff]   ;;  %v1381_v10 = vld [vmem:[%s1601_s30 + $0xe8] sm:$0xff]   ;;  %s252_s11 = scalar_lea.vmem %s1741_s2, %s1222_s8  ;;  %s1436_s4 = scalar_lea.vmem %s1692_s26, 256 }
  0x1a   : > { %v1374_v3 = vld [vmem:[%s1601_s30 + $0x38] sm:$0xff]   ;;  %1246 = vmatprep.subr.bf16.mxu1 %v1373_v2  ;;  %v1378_v7 = vld [vmem:[%s1601_s30 + $0x30] sm:$0xff]   ;;  %v1382_v11 = vld [vmem:[%s1601_s30 + $0x28] sm:$0xff]   ;;  %p1437_p12 = scmp.ne.s32.totalorder %s1692_s26, %s1436_s4  ;;  %s1440_s5 = sshll.u32 %s1515_s15, 4  ;;  %s1441_s5 = int_to_ptr.vmem [resolvable:$false] %s1440_s5 }
  0x1b   : > { %v1375_v4 = vld [vmem:[%s1601_s30 + $0xb8] sm:$0xff]   ;;  %1225 = vmatpush3.bf16.msra.mxu0 %v1374_v3  ;;  %v1379_v8 = vld [vmem:[%s1601_s30 + $0xb0] sm:$0xff]   ;;  %v1383_v12 = vld [vmem:[%s1601_s30 + $0xa8] sm:$0xff]   ;;  %s1442_s6 = scalar_lea.vmem %s1441_s5, 512  ;;  %p1443_p1 = scmp.lt.s32.totalorder %s1692_s26, %s1441_s5 }
  0x1c   : > { %1247 = vmatpush3.bf16.msra.mxu1 %v1375_v4  ;;  %1226 = vmatprep.subr.bf16.mxu0 %v1376_v5  ;;  %v1384_v13 = vld [vmem:[%s1601_s30 + $0x60] sm:$0xff]   ;;  %v1388_v17 = vld [vmem:[%s1601_s30 + $0x58] sm:$0xff]   ;;  %v1392_v21 = vld [vmem:[%s1601_s30 + $0x50] sm:$0xff]   ;;  %p1438_p13 = pnand %p1437_p12, %p1578_p4  ;;  %p1444_p2 = scmp.lt.s32.totalorder %s1442_s6, %s1436_s4 }
  0x1d   : > { %1248 = vmatprep.subr.bf16.mxu1 %v1377_v6  ;;  %v1385_v14 = vld [vmem:[%s1601_s30 + $0xe0] sm:$0xff]   ;;  %v1389_v18 = vld [vmem:[%s1601_s30 + $0xd8] sm:$0xff]   ;;  %v1393_v22 = vld [vmem:[%s1601_s30 + $0xd0] sm:$0xff]  }
  0x1e   : > { %v1386_v15 = vld [vmem:[%s1601_s30 + $0x20] sm:$0xff]   ;;  %v1390_v19 = vld [vmem:[%s1601_s30 + $0x18] sm:$0xff]   ;;  %v1394_v23 = vld [vmem:[%s1601_s30 + $0x10] sm:$0xff]   ;;  %p1439_p0 = pneg %p1438_p13  ;;  %p1445_p3 = por %p1444_p2, %p1443_p1 }
  0x1f   : > { %1227 = vmatpush3.bf16.msra.mxu0 %v1378_v7  ;;  %v1387_v16 = vld [vmem:[%s1601_s30 + $0xa0] sm:$0xff]   ;;  %v1391_v20 = vld [vmem:[%s1601_s30 + $0x98] sm:$0xff]   ;;  %v1395_v24 = vld [vmem:[%s1601_s30 + $0x90] sm:$0xff]  }
  0x20   : > { %1249 = vmatpush3.bf16.msra.mxu1 %v1379_v8  ;;  %1228 = vmatprep.subr.bf16.mxu0 %v1380_v9  ;;  %v1396_v25 = vld [vmem:[%s1601_s30 + $0x48] sm:$0xff]   ;;  %v1400_v29 = vld [vmem:[%s1601_s30 + $0x40] sm:$0xff]   ;;  %v1404_v41 = vld [vmem:[%s1601_s30 + $0x178] sm:$0xff]   ;;  %p1446_p5 = pnand %p1445_p3, %p1439_p0 }
  0x21   : > { %1250 = vmatprep.subr.bf16.mxu1 %v1381_v10  ;;  %v1397_v26 = vld [vmem:[%s1601_s30 + $0xc8] sm:$0xff]   ;;  %v1401_v30 = vld [vmem:[%s1601_s30 + $0xc0] sm:$0xff]   ;;  %v1405_v42 = vld [vmem:[%s1601_s30 + $0x1f8] sm:$0xff]  }
  0x22   : > { %v1398_v27 = vld [vmem:[%s1601_s30 + $0x8] sm:$0xff]   ;;  %v1402_v31 = vld [vmem:[%s1601_s30] sm:$0xff]   ;;  %v1406_v43 = vld [vmem:[%s1601_s30 + $0x138] sm:$0xff]  }
  0x23   : > { %1229 = vmatpush3.bf16.msra.mxu0 %v1382_v11  ;;  %v1399_v28 = vld [vmem:[%s1601_s30 + $0x88] sm:$0xff]   ;;  %v1403_v32 = vld [vmem:[%s1601_s30 + $0x80] sm:$0xff]   ;;  %v1407_v44 = vld [vmem:[%s1601_s30 + $0x1b8] sm:$0xff]  }
  0x24   : > { %1251 = vmatpush3.bf16.msra.mxu1 %v1383_v12  ;;  %1230 = vmatprep.subr.bf16.mxu0 %v1384_v13  ;;  %v262_v33 = vld [vmem:[%s1637_s7] sm:$0xff]  ;;  %v263_v35 = vld [vmem:[%s1637_s7 + $0x8] sm:$0xff]  ;;  %v1408_v45 = vld [vmem:[%s1601_s30 + $0x170] sm:$0xff]  }
  0x25   : > { %1252 = vmatprep.subr.bf16.mxu1 %v1385_v14  ;;  %v266_v34 = vld [vmem:[%s1637_s7 + $0x20] sm:$0xff]  ;;  %v267_v38 = vld [vmem:[%s1637_s7 + $0x28] sm:$0xff]  ;;  %v1409_v46 = vld [vmem:[%s1601_s30 + $0x1f0] sm:$0xff]  }
  0x26   : > { %v1143_v36 = vcombine.low %v262_v33, %v266_v34  ;;  %v1144_v37 = vcombine.high %v262_v33, %v266_v34  ;;  %v1145_v39 = vcombine.low %v263_v35, %v267_v38  ;;  %v1146_v40 = vcombine.high %v263_v35, %v267_v38  ;;  %v1410_v47 = vld [vmem:[%s1601_s30 + $0x130] sm:$0xff]   ;;  %v1412_v49 = vld [vmem:[%s1601_s30 + $0x168] sm:$0xff]   ;;  %v1416_v53 = vld [vmem:[%s1601_s30 + $0x160] sm:$0xff]  }
  0x27   : > { %1231 = vmatpush3.bf16.msra.mxu0 %v1386_v15  ;;  %v1411_v48 = vld [vmem:[%s1601_s30 + $0x1b0] sm:$0xff]   ;;  %v1413_v50 = vld [vmem:[%s1601_s30 + $0x1e8] sm:$0xff]   ;;  %v1417_v54 = vld [vmem:[%s1601_s30 + $0x1e0] sm:$0xff]  }
  0x28   : > { %1253 = vmatpush3.bf16.msra.mxu1 %v1387_v16  ;;  %1232 = vmatprep.subr.bf16.mxu0 %v1388_v17  ;;  %v1414_v51 = vld [vmem:[%s1601_s30 + $0x128] sm:$0xff]   ;;  %v1418_v55 = vld [vmem:[%s1601_s30 + $0x120] sm:$0xff]   ;;  %v1420_v57 = vld [vmem:[%s1601_s30 + $0x158] sm:$0xff]  }
  0x29   : > { %1254 = vmatprep.subr.bf16.mxu1 %v1389_v18  ;;  %854 = vmatprep.mubr.bf16.mxu0 %v1144_v37  ;;  %v1415_v52 = vld [vmem:[%s1601_s30 + $0x1a8] sm:$0xff]   ;;  %v1419_v56 = vld [vmem:[%s1601_s30 + $0x1a0] sm:$0xff]   ;;  %v1421_v58 = vld [vmem:[%s1601_s30 + $0x1d8] sm:$0xff]  }
  0x2a   : > { %895 = vmatprep.mubr.bf16.mxu1 %v1146_v40  ;;  %v1422_v59 = vld [vmem:[%s1601_s30 + $0x118] sm:$0xff]   ;;  %v1424_v61 = vld [vmem:[%s1601_s30 + $0x150] sm:$0xff]   ;;  %v1428_v1 = vld [vmem:[%s1601_s30 + $0x148] sm:$0xff]  }
  0x2b   : > { %1233 = vmatpush3.bf16.msra.mxu0 %v1390_v19  ;;  %v1423_v60 = vld [vmem:[%s1601_s30 + $0x198] sm:$0xff]   ;;  %v1425_v62 = vld [vmem:[%s1601_s30 + $0x1d0] sm:$0xff]   ;;  %v1429_v2 = vld [vmem:[%s1601_s30 + $0x1c8] sm:$0xff]  }
  0x2c   : > { %1255 = vmatpush3.bf16.msra.mxu1 %v1391_v20  ;;  %1234 = vmatprep.subr.bf16.mxu0 %v1392_v21  ;;  %v1426_v63 = vld [vmem:[%s1601_s30 + $0x110] sm:$0xff]   ;;  %v1430_v3 = vld [vmem:[%s1601_s30 + $0x108] sm:$0xff]   ;;  %v1432_v5 = vld [vmem:[%s1601_s30 + $0x140] sm:$0xff]  }
  0x2d   : > { %1256 = vmatprep.subr.bf16.mxu1 %v1393_v22  ;;  %v1427_v0 = vld [vmem:[%s1601_s30 + $0x190] sm:$0xff]   ;;  %v1431_v4 = vld [vmem:[%s1601_s30 + $0x188] sm:$0xff]   ;;  %v1433_v6 = vld [vmem:[%s1601_s30 + $0x1c0] sm:$0xff]  }
  0x2e   : > { %v1434_v7 = vld [vmem:[%s1601_s30 + $0x100] sm:$0xff]   ;;  %v264_v9 = vld [vmem:[%s1637_s7 + $0x10] sm:$0xff]  ;;  %v265_v13 = vld [vmem:[%s1637_s7 + $0x18] sm:$0xff] }
  0x2f   : > { %1235 = vmatpush3.bf16.msra.mxu0 %v1394_v23  ;;  %v1435_v8 = vld [vmem:[%s1601_s30 + $0x180] sm:$0xff]   ;;  %v268_v10 = vld [vmem:[%s1637_s7 + $0x30] sm:$0xff]  ;;  %v269_v14 = vld [vmem:[%s1637_s7 + $0x38] sm:$0xff]  ;;  %s1694_s30 = scalar_lea.sflag [#allocation3], %s225_s18 }
  0x30   : > { %1257 = vmatpush3.bf16.msra.mxu1 %v1395_v24  ;;  %1236 = vmatprep.subr.bf16.mxu0 %v1396_v25  ;;  %v1147_v11 = vcombine.low %v264_v9, %v268_v10  ;;  %v1148_v12 = vcombine.high %v264_v9, %v268_v10  ;;  %v995_v15 = vld [vmem:[%s252_s11] sm:$0xff]  ;;  %v1149_v16 = vcombine.low %v265_v13, %v269_v14  ;;  %v996_v18 = vld [vmem:[%s252_s11 + $0x8] sm:$0xff] }
  0x31   : > { %1258 = vmatprep.subr.bf16.mxu1 %v1397_v26  ;;  %v1150_v17 = vcombine.high %v265_v13, %v269_v14  ;;  %999 = vperm.xlu0 %1371, %v995_v15  }
  0x33   : > { %1237 = vmatpush3.bf16.msra.mxu0 %v1398_v27 }
  0x34   : > { %1259 = vmatpush3.bf16.msra.mxu1 %v1399_v28  ;;  %1238 = vmatprep.subr.bf16.mxu0 %v1400_v29 }
  0x35   : > { %1260 = vmatprep.subr.bf16.mxu1 %v1401_v30  ;;  %1004 = vperm.xlu0 %1371, %v996_v18  }
  0x37   : > { %1239 = vmatpush3.bf16.msra.mxu0 %v1402_v31 }
  0x38   : > { %1261 = vmatpush3.bf16.msra.mxu1 %v1403_v32  ;;  %1268 = vmatprep.subr.bf16.mxu0 %v1404_v41 }
  0x39   : > { %1290 = vmatprep.subr.bf16.mxu1 %v1405_v42 }
  0x3a   : > { %855 = vmatmul.mubr.bf16.vlgmr.msra.gmra.mxu0 %v1143_v36 }
  0x3b   : > { %896 = vmatmul.mubr.bf16.vlgmr.msra.gmra.mxu1 %v1145_v39  ;;  %1269 = vmatpush3.bf16.msra.mxu0 %v1406_v43 }
  0x3c   : > { %1291 = vmatpush3.bf16.msra.mxu1 %v1407_v44  ;;  %1270 = vmatprep.subr.bf16.mxu0 %v1408_v45 }
  0x3d   : > { %1292 = vmatprep.subr.bf16.mxu1 %v1409_v46  ;;  %936 = vmatprep.mubr.bf16.mxu0 %v1148_v12 }
  0x3e   : > { %977 = vmatprep.mubr.bf16.mxu1 %v1150_v17 }
  0x3f   : > { %1271 = vmatpush3.bf16.msra.mxu0 %v1410_v47 }
  0x40   : > { %1293 = vmatpush3.bf16.msra.mxu1 %v1411_v48  ;;  %1272 = vmatprep.subr.bf16.mxu0 %v1412_v49 }
  0x41   : > { %1294 = vmatprep.subr.bf16.mxu1 %v1413_v50 }
  0x43   : > { %1273 = vmatpush3.bf16.msra.mxu0 %v1414_v51 }
  0x44   : > { %1295 = vmatpush3.bf16.msra.mxu1 %v1415_v52  ;;  %1274 = vmatprep.subr.bf16.mxu0 %v1416_v53 }
  0x45   : > { %1296 = vmatprep.subr.bf16.mxu1 %v1417_v54 }
  0x47   : > { %1275 = vmatpush3.bf16.msra.mxu0 %v1418_v55 }
  0x48   : > { %1297 = vmatpush3.bf16.msra.mxu1 %v1419_v56  ;;  %1276 = vmatprep.subr.bf16.mxu0 %v1420_v57 }
  0x49   : > { %1298 = vmatprep.subr.bf16.mxu1 %v1421_v58 }
  0x4b   : > { %1277 = vmatpush3.bf16.msra.mxu0 %v1422_v59 }
  0x4c   : > { %1299 = vmatpush3.bf16.msra.mxu1 %v1423_v60  ;;  %1278 = vmatprep.subr.bf16.mxu0 %v1424_v61 }
  0x4d   : > { %1300 = vmatprep.subr.bf16.mxu1 %v1425_v62 }
  0x4f   : > { %1279 = vmatpush3.bf16.msra.mxu0 %v1426_v63 }
  0x50   : > { %1301 = vmatpush3.bf16.msra.mxu1 %v1427_v0  ;;  %1280 = vmatprep.subr.bf16.mxu0 %v1428_v1 }
  0x51   : > { %1302 = vmatprep.subr.bf16.mxu1 %v1429_v2 }
  0x53   : > { %1281 = vmatpush3.bf16.msra.mxu0 %v1430_v3 }
  0x54   : > { %1303 = vmatpush3.bf16.msra.mxu1 %v1431_v4  ;;  %1282 = vmatprep.subr.bf16.mxu0 %v1432_v5 }
  0x55   : > { %1304 = vmatprep.subr.bf16.mxu1 %v1433_v6 }
  0x57   : > { %1283 = vmatpush3.bf16.msra.mxu0 %v1434_v7 }
  0x58   : > { %1305 = vmatpush3.bf16.msra.mxu1 %v1435_v8 }
  0x5a   : > { %937 = vmatmul.mubr.bf16.vlgmr.msra.gmra.mxu0 %v1147_v11 }
  0x5b   : > { %978 = vmatmul.mubr.bf16.vlgmr.msra.gmra.mxu1 %v1149_v16 }
  0xac   : > { %v1000_v46 = vpop.permute.xlu0 %999 }
  0xb0   : > { %v1005_v51 = vpop.permute.xlu0 %1004 }
  0xfa   : > { %v1240_v19 = vpop.f32.mrf.mxu0 }
  0xfb   : > { %v1262_v20 = vpop.f32.mrf.mxu1 }
  0xfc   : > { %v1241_v21 = vpop.f32.mrf.mxu0 }
  0xfd   : > { %v1263_v22 = vpop.f32.mrf.mxu1  ;;  %v1242_v26 = vadd.f32 %v1241_v21, %v1240_v19 }
  0xfe   : > { %v1243_v23 = vpop.f32.mrf.mxu0  ;;  %v1264_v27 = vadd.f32 %v1263_v22, %v1262_v20 }
  0xff   : > { %v1265_v24 = vpop.f32.mrf.mxu1 }
 0x100   : > { %v1244_v25 = vpop.f32.mrf.mxu0  ;;  %v898_v32 = vadd.f32 %v1264_v27, %v1242_v26 }
 0x101   : > { %v1266_v28 = vpop.f32.mrf.mxu1  ;;  %v1245_v33 = vadd.f32 %v1244_v25, %v1243_v23 }
 0x102   : > { %v1267_v34 = vadd.f32 %v1266_v28, %v1265_v24 }
 0x104   : > { %v901_v42 = vadd.f32 %v1267_v34, %v1245_v33 }
 0x11a   : > { %v1284_v29 = vpop.f32.mrf.mxu0 }
 0x11b   : > { %v1306_v30 = vpop.f32.mrf.mxu1 }
 0x11c   : > { %v1285_v31 = vpop.f32.mrf.mxu0 }
 0x11d   : > { %v1286_v35 = vadd.f32 %v1285_v31, %v1284_v29  ;;  %v1307_v36 = vpop.f32.mrf.mxu1 }
 0x11e   : > { %v1287_v37 = vpop.f32.mrf.mxu0  ;;  %v1308_v39 = vadd.f32 %v1307_v36, %v1306_v30 }
 0x11f   : > { %v939_v38 = vadd.f32 %v1286_v35, %v898_v32  ;;  %v1309_v40 = vpop.f32.mrf.mxu1 }
 0x120   : > { %v1288_v41 = vpop.f32.mrf.mxu0 }
 0x121   : > { %v980_v43 = vadd.f32 %v1308_v39, %v939_v38  ;;  %v1289_v44 = vadd.f32 %v1288_v41, %v1287_v37  ;;  %v1310_v45 = vpop.f32.mrf.mxu1 }
 0x122   : > { %v1311_v48 = vadd.f32 %v1310_v45, %v1309_v40 }
 0x123   : > { %v942_v47 = vadd.f32 %v1289_v44, %v901_v42  ;;  %v1007_v50 = vmul.f32 %v1000_v46, %v980_v43 }
 0x125   : > { %v983_v49 = vadd.f32 %v1311_v48, %v942_v47  ;;  %1009 = vst [vmem:[%s227_s23] sm:$0xff] %v1007_v50 }
 0x127   : > { %v1008_v52 = vmul.f32 %v1005_v51, %v983_v49 }
 0x129   : > { %1010 = vst [vmem:[%s227_s23 + $0x8] sm:$0xff] %v1008_v52 }
 0x12a   : > { %1449 = shalt.err (!%p1446_p5)
}
 0x12b   : > { %s1450_s7 = scalar_lea.hbm %s1690_s29, 256  ;;  %s1454_s10 = scalar_lea.hbm %s1742_s3, 512 }
 0x12c   : > { %p1451_p6 = scmp.ne.s32.totalorder %s1690_s29, %s1450_s7  ;;  %p1455_p10 = scmp.lt.s32.totalorder %s1690_s29, %s1742_s3 }
 0x12d   : > { %p1456_p11 = scmp.lt.s32.totalorder %s1454_s10, %s1450_s7 }
 0x12e   : > { %p1452_p7 = pnand %p1451_p6, %p1578_p4 }
 0x12f   : > { %p1457_p12 = por %p1456_p11, %p1455_p10 }
 0x130   : > { %p1453_p9 = pneg %p1452_p7 }
 0x132   : > { %p1458_p13 = pnand %p1457_p12, %p1453_p9 }
 0x134   : > { %1461 = shalt.err (!%p1458_p13)
}
 0x135   : > { %s1516_s19 = smov 128   ;;  %s1517_s21 = smov 8  }
 0x136   : > { %1312 = dma.vmem_to_hbm [thread:$0]  (%p1578_p4), %s1692_s26, 256, %s1690_s29, %s1694_s30, %s1516_s19, %s1516_s19, %s1517_s21  }
 0x137 PF: > { %p1318_p0 = scmp.ge.s32.totalorder %s1512_s17, 2  ;;  %s1040_s23 = sand.u32 1, %s1492_s12  }
 0x138   : > { %s1041_s27 = scalar_lea.sflag [#allocation3], %s1040_s23 }
 0x139   : > { %p1315_p1 = pnand %p1318_p0, %p1585_p8 }
 0x13b   : > { %p1316_p2 = pneg %p1315_p1 }
 0x13d   : > { %1487 = dma.done.wait (%p1316_p2), %s1041_s27, 256  }
 0x13e   : > { %1489 = vsyncadd (%p1316_p2), %s1041_s27, 4294967040  ;;  %s16_s17 = sadd.s32 1, %s1512_s17   ;;  %s1745_s12 = smov %s1496_s13 }
 0x13f   : > { %p13_p3 = scmp.ge.s32.totalorder %s16_s17, 4   ;;  %s1746_s13 = smov %s1500_s14 }
 0x140   : > { %s1747_s14 = smov %s1591_s25  ;;  %s1748_s15 = smov %s1508_s16 }
 0x141   : > { %s1749_s16 = smov %s1751_s20  ;;  %15 = sbr.rel (!%p13_p3) target bundleno = 4 (0x4), region = 81 }
 0x146   :  { %1046 = vsyncpa [#allocation3], 1 }
 0x147   :  { %1048 = vsyncpa [#allocation3 + $0x1], 1 }

</bundles_post_ra>
